<compile_context>
chip_gen: v7x
topology: tpu7x:2x2x1
jax: 0.10.0
libtpu: 0.0.40
codegen_flags: <defaults>
</compile_context>

<pallas_src>
import math
import functools

import jax
import jax.numpy as jnp
from jax.experimental import pallas as pl
from jax.experimental.pallas import tpu as pltpu

d_model = 32
d_vocab = 2
LANES = 128


def pack_embed_params(W_E):
    """One-time (init-side) repack of the torch-layout embedding table.

    W_E: (d_model, d_vocab), as in the PyTorch module.
    Returns wpk: (d_vocab, G, 128) with G = 128 // d_model and
      wpk[v, g, g*d_model:(g+1)*d_model] = W_E[:, v], zeros elsewhere.
    Doing the transpose + packing once at parameter-init keeps the per-call
    path free of full-table layout work (perf-review item).
    """
    d, V = W_E.shape
    if LANES % d != 0:
        # TODO(synk): general d_model (not a divisor of 128) needs the plain
        # (tm, d) one-hot path; not needed for this module (d_model=32).
        raise NotImplementedError("packed embed path requires d_model | 128")
    G = LANES // d
    w_rows = W_E.T                                    # (V, d): one row per token id
    eye = jnp.eye(G, dtype=W_E.dtype)                 # (G, G)
    wpk = (eye[None, :, :, None] * w_rows[:, None, None, :]).reshape(V, G, LANES)
    return wpk


def _pick_block_rows(nq, max_rows=256):
    """Choose (padded row count, rows per block) for nq 128-lane output rows.

    Rows-per-block is always a multiple of 8 (sublane tiling); when there is
    enough work we keep >= 2 grid blocks so the "parallel" axis can shard
    across TensorCores (v7x).  Padding rows are cheap and sliced off later.
    """
    nq_pad = -(-nq // 8) * 8
    if nq_pad <= 8:
        return nq_pad, nq_pad                         # single block
    cap = min(max_rows, max(8, nq_pad // 2))          # aim for >= 2 blocks
    tmq = 8
    for t in range(8, cap + 1, 8):
        if nq_pad % t == 0:
            tmq = t
    return nq_pad, tmq


def _embed_kernel(ids_ref, wpk_ref, o_ref):
    # ids_ref: (tmq, G) int32  -- the G token ids feeding one 128-lane out row
    # wpk_ref: (V, G, 128)     -- block-diagonal packed table, VMEM-resident
    # o_ref:   (tmq, 128)      -- lane-dense output block
    ids = ids_ref[...]
    V = wpk_ref.shape[0]
    acc = jnp.zeros(o_ref.shape, jnp.float32)
    # Tiny static vocab: one (tmq, G) @ (G, 128) MXU contraction per id value.
    #   out[q, g*d + j] = sum_v [ids[q, g] == v] * W_rows[v, j]
    for v in range(V):
        mask = (ids == v).astype(wpk_ref.dtype)
        acc = acc + jnp.dot(mask, wpk_ref[v], preferred_element_type=jnp.float32)
    # NOTE: an out-of-range id contributes an all-zero row (PyTorch raises
    # IndexError; there is no in-kernel raise, so invalid ids stay visible as
    # zero embeddings rather than being silently clamped to a valid row).
    o_ref[...] = acc.astype(o_ref.dtype)


@functools.partial(jax.jit, static_argnames=("max_rows",))
def embed(x, wpk, *, max_rows=256):
    """x: (batch, pos) integer token ids; wpk: output of pack_embed_params.
    Returns (batch, pos, d_model), matching torch.einsum('dbp->bpd', W_E[:, x])."""
    b, p = x.shape
    V, G, lanes = wpk.shape
    d = lanes // G
    n = b * p

    nq = -(-n // G)                                   # 128-lane output rows needed
    nq_pad, tmq = _pick_block_rows(nq, max_rows)
    n_pad = nq_pad * G

    ids = x.reshape(n).astype(jnp.int32)
    if n_pad != n:
        ids = jnp.pad(ids, (0, n_pad - n))            # pad with a valid id (0)
    ids2 = ids.reshape(nq_pad, G)

    grid = (nq_pad // tmq,)
    cost = pl.CostEstimate(
        flops=2 * nq_pad * lanes * G * V,
        transcendentals=0,
        bytes_accessed=(ids2.size * 4
                        + wpk.size * wpk.dtype.itemsize
                        + nq_pad * lanes * wpk.dtype.itemsize),
    )

    out = pl.pallas_call(
        _embed_kernel,
        out_shape=jax.ShapeDtypeStruct((nq_pad, lanes), wpk.dtype),
        grid_spec=pltpu.PrefetchScalarGridSpec(
            num_scalar_prefetch=0,
            grid=grid,
            in_specs=[
                pl.BlockSpec((tmq, G), lambda i: (i, 0)),          # ids, per block
                pl.BlockSpec((V, G, lanes), lambda i: (0, 0, 0)),  # whole table
            ],
            out_specs=pl.BlockSpec((tmq, lanes), lambda i: (i, 0)),
        ),
        compiler_params=pltpu.CompilerParams(
            dimension_semantics=("parallel",)),
        cost_estimate=cost,
    )(ids2, wpk)

    # (nq_pad, 128) row-major == (nq_pad*G, d) row-major: pure layout plumbing.
    return out.reshape(nq_pad * G, d)[:n].reshape(b, p, d)


if __name__ == "__main__":
    key = jax.random.PRNGKey(0)
    k_w, k_x = jax.random.split(key)

    # Same init distribution as the PyTorch module:
    #   W_E = randn(d_model, d_vocab) / sqrt(d_model)
    W_E = (jax.random.normal(k_w, (d_model, d_vocab), dtype=jnp.float32)
           / math.sqrt(d_model))
    wpk = pack_embed_params(W_E)          # one-time, init-side packing

    batch, pos = 2, 8
    x = jax.random.randint(k_x, (batch, pos), 0, d_vocab, dtype=jnp.int32)

    out = embed(x, wpk)
    out = jax.block_until_ready(out)

    # Pure-JAX reference: out[b, p, d] = W_E[d, x[b, p]]
    ref = jnp.transpose(W_E[:, x], (1, 2, 0))        # (batch, pos, d_model)
    assert out.shape == (batch, pos, d_model)
    assert jnp.allclose(out, ref, atol=1e-6), "mismatch vs reference"

    print("KERNEL_OK")
</pallas_src>

<mosaic_0001>
module attributes {stable_mosaic.version = 11 : i64} {
  func.func @_embed_kernel(%arg0: i32, %arg1: memref<8x4xi32, #tpu.memory_space<vmem>>, %arg2: memref<2x4x128xf32, #tpu.memory_space<vmem>>, %arg3: memref<8x128xf32, #tpu.memory_space<vmem>>) attributes {dimension_semantics = [#tpu.dimension_semantics<parallel>], iteration_bounds = array<i64: 1>, scalar_prefetch = 0 : i64, scratch_operands = 0 : i64, tpu.core_type = #tpu.core_type<tc>, window_params = [{transform_indices = @transform_0, window_bounds = array<i64: 8, 4>}, {pipeline_mode = #tpu.pipeline_mode<synchronous>, transform_indices = @transform_1, window_bounds = array<i64: 2, 4, 128>}, {transform_indices = @transform_2, window_bounds = array<i64: 8, 128>}]} {
    %c0 = arith.constant 0 : index
    %c0_0 = arith.constant 0 : index
    %0 = vector.load %arg1[%c0, %c0_0] : memref<8x4xi32, #tpu.memory_space<vmem>>, vector<8x4xi32>
    %cst = arith.constant 0.000000e+00 : f32
    %1 = vector.broadcast %cst : f32 to vector<8x128xf32>
    %c0_i32 = arith.constant 0 : i32
    %2 = vector.broadcast %c0_i32 : i32 to vector<8x4xi32>
    %3 = arith.cmpi eq, %0, %2 : vector<8x4xi32>
    %4 = arith.extui %3 : vector<8x4xi1> to vector<8x4xi32>
    %5 = arith.sitofp %4 : vector<8x4xi32> to vector<8x4xf32>
    %c0_1 = arith.constant 0 : index
    %c0_2 = arith.constant 0 : index
    %c0_3 = arith.constant 0 : index
    %6 = vector.load %arg2[%c0_1, %c0_2, %c0_3] : memref<2x4x128xf32, #tpu.memory_space<vmem>>, vector<1x4x128xf32>
    %7 = vector.shape_cast %6 : vector<1x4x128xf32> to vector<4x128xf32>
    %cst_4 = arith.constant dense<0.000000e+00> : vector<8x128xf32>
    %8 = tpu.matmul %5, %7, %cst_4 {dimension_numbers = #tpu.dot_dimension_numbers<[1], [0], [0], [1], [0, 0, 1, 1], [], []>} : vector<8x4xf32>, vector<4x128xf32>, vector<8x128xf32> -> vector<8x128xf32>
    %9 = arith.addf %1, %8 : vector<8x128xf32>
    %c1_i32 = arith.constant 1 : i32
    %10 = vector.broadcast %c1_i32 : i32 to vector<8x4xi32>
    %11 = arith.cmpi eq, %0, %10 : vector<8x4xi32>
    %12 = arith.extui %11 : vector<8x4xi1> to vector<8x4xi32>
    %13 = arith.sitofp %12 : vector<8x4xi32> to vector<8x4xf32>
    %c1 = arith.constant 1 : index
    %c0_5 = arith.constant 0 : index
    %c0_6 = arith.constant 0 : index
    %14 = vector.load %arg2[%c1, %c0_5, %c0_6] : memref<2x4x128xf32, #tpu.memory_space<vmem>>, vector<1x4x128xf32>
    %15 = vector.shape_cast %14 : vector<1x4x128xf32> to vector<4x128xf32>
    %cst_7 = arith.constant dense<0.000000e+00> : vector<8x128xf32>
    %16 = tpu.matmul %13, %15, %cst_7 {dimension_numbers = #tpu.dot_dimension_numbers<[1], [0], [0], [1], [0, 0, 1, 1], [], []>} : vector<8x4xf32>, vector<4x128xf32>, vector<8x128xf32> -> vector<8x128xf32>
    %17 = arith.addf %9, %16 : vector<8x128xf32>
    %c0_8 = arith.constant 0 : index
    %c0_9 = arith.constant 0 : index
    %18 = vector.load %arg3[%c0_8, %c0_9] : memref<8x128xf32, #tpu.memory_space<vmem>>, vector<8x128xf32>
    tpu.vector_store %arg3[%c0_8, %c0_9], %17 {strides = array<i32>} : memref<8x128xf32, #tpu.memory_space<vmem>>, vector<8x128xf32>,
    return
  }
  func.func @transform_0(%arg0: i32) -> (i32, i32) {
    %c0_i32 = arith.constant 0 : i32
    %c0_i32_0 = arith.constant 0 : i32
    return %arg0, %c0_i32 : i32, i32
  }
  func.func @transform_1(%arg0: i32) -> (i32, i32, i32) {
    %c0_i32 = arith.constant 0 : i32
    %c0_i32_0 = arith.constant 0 : i32
    %c0_i32_1 = arith.constant 0 : i32
    %c0_i32_2 = arith.constant 0 : i32
    return %c0_i32, %c0_i32_0, %c0_i32_1 : i32, i32, i32
  }
  func.func @transform_2(%arg0: i32) -> (i32, i32) {
    %c0_i32 = arith.constant 0 : i32
    %c0_i32_0 = arith.constant 0 : i32
    return %arg0, %c0_i32 : i32, i32
  }
}

</mosaic_0001>

<bundles_post_ra>
// kernel: embed.1
= control target key start
LH: loop header
LB: loop body
LE: loop exit
PB: predicated region body
PF: predicated region fallthrough
CT: control target
= control target key end

     0   :  { %vm25_vm0 = vcmask 1043456   ;;  %v204_v0 = vmov 0.0   ;;  %vm21_vm1 = vcmask 31744   ;;  %vm205_vm2 = vmmov 0   ;;  %s233_s1 = inlined_call_operand.vmem [shape: f32[2,4,128], index: 1, kind: input, shape index: {}]   ;;  %s234_s0 = inlined_call_operand.vmem [shape: s32[8,4], index: 0, kind: input, shape index: {}]   ;;  %s235_s2 = inlined_call_operand.vmem [shape: f32[8,128], index: 2, kind: output, shape index: {}]  }
   0x1   :  { %191 = vmatprep.subr.mxu1 %v204_v0  ;;  %196 = vmatprep.subr.mxu0 %v204_v0  ;;  %v182_v1 = vld [vmem:[%s233_s1 + $0x4] sm:$0xf]  ;;  %v15_v2 = vld [vmem:[%s233_s1] sm:$0xf] }
   0x2   :  { %v11_v3 = vld [vmem:[%s234_s0] sm:$0xff]  ;;  %192 = vmatpush3.msk.msra.mxu1 %vm25_vm0, %v182_v1  ;;  %193 = vmatprep.mubr.msk.f32.mxu1 %vm205_vm2, %v204_v0 }
   0x3   :  { %vm16_vm3 = vcmp.eq.s32.totalorder %v11_v3, 1  ;;  %vm12_vm4 = vcmp.eq.s32.totalorder %v11_v3, 0  ;;  %197 = vmatpush3.msk.msra.mxu0 %vm25_vm0, %v15_v2  ;;  %198 = vmatprep.mubr.msk.f32.mxu0 %vm205_vm2, %v204_v0 }
   0x4   :  { %v181_v4 = vsel %vm16_vm3, 1.0, %v204_v0  ;;  %v180_v5 = vsel %vm12_vm4, 1.0, %v204_v0 }
   0x5   :  { %194 = vmatmul.mubr.msk.f32.vlgmr.msra.gmra.mrb[0].mxu1 %vm21_vm1, %v181_v4  ;;  %199 = vmatmul.mubr.msk.f32.vlgmr.msra.gmra.mrb[0].mxu0 %vm21_vm1, %v180_v5 }
  0xd8   :  { %v95_v6 = vpop.f32.mrb[0].mxu1  ;;  %v171_v7 = vpop.f32.mrb[0].mxu0 }
  0xd9   :  { %v172_v8 = vadd.f32 %v171_v7, %v95_v6  ;;  %v195_v9 = vpop.f32.mrb[1].mxu1  ;;  %v200_v10 = vpop.f32.mrb[1].mxu0 }
  0xdb   :  { %175 = vst [vmem:[%s235_s2] sm:$0xff] %v172_v8 }

</bundles_post_ra>
